<compile_context>
chip_gen: v6e
topology: v6e:2x2x1
jax: 0.10.0
libtpu: 0.0.40
codegen_flags: <defaults>
</compile_context>

<pallas_src>
import functools

import jax
import jax.numpy as jnp
from jax.experimental import pallas as pl
from jax.experimental.pallas import tpu as pltpu

INPUT_FEATURES = 28 * 28   # 784
LANES = 128


def _round_up(x, m):
    return (x + m - 1) // m * m


def _leaky_relu(x, slope=0.2):
    return jnp.where(x >= 0, x, slope * x)


def discriminator_kernel(x_ref,
                         w1_ref, b1_ref,
                         w2_ref, b2_ref,
                         w3_ref, b3_ref,
                         w4_ref, b4_ref,
                         o_ref):
    # x tile: (TB, 784) f32 straight from HBM; weights bf16 (VMEM-resident
    # across all grid steps); biases f32.
    x = x_ref[...].astype(jnp.bfloat16)
    h = jnp.dot(x, w1_ref[...], preferred_element_type=jnp.float32) + b1_ref[...]
    h = _leaky_relu(h)
    # TODO(synk): training-mode Dropout(0.2) would need pltpu.prng_seed +
    #             pltpu.stateful_bernoulli masking with 1/(1-p) scaling;
    #             eval-mode (identity) semantics are used here.
    h = jnp.dot(h.astype(jnp.bfloat16), w2_ref[...],
                preferred_element_type=jnp.float32) + b2_ref[...]
    h = _leaky_relu(h)
    h = jnp.dot(h.astype(jnp.bfloat16), w3_ref[...],
                preferred_element_type=jnp.float32) + b3_ref[...]
    h = _leaky_relu(h)
    out = jnp.dot(h.astype(jnp.bfloat16), w4_ref[...],
                  preferred_element_type=jnp.float32) + b4_ref[...]
    # Write back only the real logit columns (masked store; HBM bytes are the
    # binding resource, so fewer bytes wins).
    o_ref[...] = out[:, :o_ref.shape[1]].astype(o_ref.dtype)


def prepare_params(params):
    """Pad/cast parameters ONCE (e.g. after each optimizer step).

    Weights -> bf16 with hidden/output widths zero-padded to multiples of 128
    so every intermediate is lane-dense; biases stay f32 (zero-padded cols).
    Zero pad-columns stay zero through leaky_relu and meet zero pad-rows in
    the next layer's weight, so numerics are unchanged.
    """
    dims_in = [w.shape[0] for (w, _) in params]
    dims_out = [w.shape[1] for (w, _) in params]
    pad_in = [dims_in[0]] + [_round_up(d, LANES) for d in dims_in[1:]]
    pad_out = [_round_up(d, LANES) for d in dims_out]

    flat = []
    for (w, b), pi, po in zip(params, pad_in, pad_out):
        wp = jnp.zeros((pi, po), jnp.bfloat16)
        wp = wp.at[:w.shape[0], :w.shape[1]].set(w.astype(jnp.bfloat16))
        bp = jnp.zeros((1, po), jnp.float32)
        bp = bp.at[:, :w.shape[1]].set(b.reshape(1, -1).astype(jnp.float32))
        flat.extend([wp, bp])
    return tuple(flat), dims_out[-1]


def _choose_tile_b(b_pad, max_tile=1024, min_steps=4):
    """Largest multiple-of-8 divisor of b_pad that is <= max_tile and (when
    possible) leaves >= min_steps grid steps (v7x 2-TC sharding + DMA depth)."""
    divisors = [d for d in range(8, min(max_tile, b_pad) + 1, 8)
                if b_pad % d == 0]
    if not divisors:
        return b_pad
    good = [d for d in divisors if b_pad // d >= min_steps]
    return max(good) if good else max(divisors)


def discriminator_forward(x, prepared_params, out_size=1, max_tile=1024):
    """x: (..., 784)-reshapeable float input, like x.view(-1, 28*28)."""
    w1, b1, w2, b2, w3, b3, w4, b4 = prepared_params
    x2d = x.reshape(-1, INPUT_FEATURES).astype(jnp.float32)
    B = x2d.shape[0]

    # Pad batch only to a sublane multiple of 8 (never to a tile multiple).
    B_pad = _round_up(B, 8)
    if B_pad != B:
        x2d = jnp.pad(x2d, ((0, B_pad - B), (0, 0)))
    tile_b = _choose_tile_b(B_pad, max_tile=max_tile)
    grid = (B_pad // tile_b,)

    const = lambda i: (0, 0)   # weights/biases resident across all grid steps

    flops = 2 * B_pad * (w1.shape[0] * w1.shape[1] + w2.shape[0] * w2.shape[1]
                         + w3.shape[0] * w3.shape[1] + w4.shape[0] * w4.shape[1])
    bytes_accessed = (B_pad * INPUT_FEATURES * 4
                      + sum(int(a.size) * a.dtype.itemsize
                            for a in prepared_params)
                      + B_pad * out_size * 4)

    out = pl.pallas_call(
        discriminator_kernel,
        out_shape=jax.ShapeDtypeStruct((B_pad, out_size), jnp.float32),
        grid=grid,
        in_specs=[
            # x: last dim equals the full array dim (784) -> no 128-pad copy.
            pl.BlockSpec((tile_b, INPUT_FEATURES), lambda i: (i, 0)),
            pl.BlockSpec(w1.shape, const),
            pl.BlockSpec(b1.shape, const),
            pl.BlockSpec(w2.shape, const),
            pl.BlockSpec(b2.shape, const),
            pl.BlockSpec(w3.shape, const),
            pl.BlockSpec(b3.shape, const),
            pl.BlockSpec(w4.shape, const),
            pl.BlockSpec(b4.shape, const),
        ],
        out_specs=pl.BlockSpec((tile_b, out_size), lambda i: (i, 0)),
        compiler_params=pltpu.CompilerParams(
            dimension_semantics=("parallel",)),
        cost_estimate=pl.CostEstimate(
            flops=flops, transcendentals=0, bytes_accessed=bytes_accessed),
    )(x2d, w1, b1, w2, b2, w3, b3, w4, b4)

    return out[:B]


def init_params(key, input_size=784, output_size=1, hidden_dim=32):
    """Deterministic init mimicking nn.Linear default: U(-1/sqrt(fan_in), +)."""
    dims = [input_size, hidden_dim * 4, hidden_dim * 2, hidden_dim, output_size]
    params = []
    for i in range(4):
        fan_in, fan_out = dims[i], dims[i + 1]
        key, kw, kb = jax.random.split(key, 3)
        bound = 1.0 / jnp.sqrt(fan_in)
        # stored as (in, out) so the kernel does x @ w
        w = jax.random.uniform(kw, (fan_in, fan_out), jnp.float32, -bound, bound)
        b = jax.random.uniform(kb, (1, fan_out), jnp.float32, -bound, bound)
        params.append((w, b))
    return params


def reference_forward(x, params):
    """Pure-JAX reference with the kernel's numerics (bf16 matmul inputs,
    f32 accumulation, eval-mode dropout), using the UNPADDED params."""
    h = x.reshape(-1, INPUT_FEATURES).astype(jnp.float32)
    for i, (w, b) in enumerate(params):
        h = jnp.dot(h.astype(jnp.bfloat16), w.astype(jnp.bfloat16),
                    preferred_element_type=jnp.float32)
        h = h + b.reshape(1, -1).astype(jnp.float32)
        if i < 3:
            h = _leaky_relu(h)
    return h


if __name__ == "__main__":
    key = jax.random.PRNGKey(0)
    k_params, k_x = jax.random.split(key)

    input_size, output_size, hidden_dim = 784, 1, 32
    params = init_params(k_params, input_size, output_size, hidden_dim)
    prepared, out_size = prepare_params(params)

    # Small batch of MNIST-shaped inputs (B, 1, 28, 28); B=32 auto-selects
    # tile_b=8 -> a 4-step batch grid, so the pipelined/tiled path is exercised.
    x = jax.random.normal(k_x, (32, 1, 28, 28), jnp.float32)

    fwd = jax.jit(functools.partial(discriminator_forward, out_size=out_size))
    out = jax.block_until_ready(fwd(x, prepared))
    ref = reference_forward(x, params)

    assert out.shape == (32, 1), out.shape
    assert jnp.allclose(out, ref, atol=1e-3, rtol=1e-3), "mismatch vs reference"

    print("KERNEL_OK")
</pallas_src>

<mosaic_0001>
module attributes {stable_mosaic.version = 11 : i64} {
  func.func @discriminator_kernel(%arg0: i32, %arg1: memref<8x784xf32, #tpu.memory_space<vmem>>, %arg2: memref<784x128xbf16, #tpu.memory_space<vmem>>, %arg3: memref<1x128xf32, #tpu.memory_space<vmem>>, %arg4: memref<128x128xbf16, #tpu.memory_space<vmem>>, %arg5: memref<1x128xf32, #tpu.memory_space<vmem>>, %arg6: memref<128x128xbf16, #tpu.memory_space<vmem>>, %arg7: memref<1x128xf32, #tpu.memory_space<vmem>>, %arg8: memref<128x128xbf16, #tpu.memory_space<vmem>>, %arg9: memref<1x128xf32, #tpu.memory_space<vmem>>, %arg10: memref<8x1xf32, #tpu.memory_space<vmem>>) attributes {dimension_semantics = [#tpu.dimension_semantics<parallel>], iteration_bounds = array<i64: 4>, scalar_prefetch = 0 : i64, scratch_operands = 0 : i64, tpu.core_type = #tpu.core_type<tc>, window_params = [{transform_indices = @transform_0, window_bounds = array<i64: 8, 784>}, {pipeline_mode = #tpu.pipeline_mode<synchronous>, transform_indices = @transform_1, window_bounds = array<i64: 784, 128>}, {pipeline_mode = #tpu.pipeline_mode<synchronous>, transform_indices = @transform_2, window_bounds = array<i64: 1, 128>}, {pipeline_mode = #tpu.pipeline_mode<synchronous>, transform_indices = @transform_3, window_bounds = array<i64: 128, 128>}, {pipeline_mode = #tpu.pipeline_mode<synchronous>, transform_indices = @transform_4, window_bounds = array<i64: 1, 128>}, {pipeline_mode = #tpu.pipeline_mode<synchronous>, transform_indices = @transform_5, window_bounds = array<i64: 128, 128>}, {pipeline_mode = #tpu.pipeline_mode<synchronous>, transform_indices = @transform_6, window_bounds = array<i64: 1, 128>}, {pipeline_mode = #tpu.pipeline_mode<synchronous>, transform_indices = @transform_7, window_bounds = array<i64: 128, 128>}, {pipeline_mode = #tpu.pipeline_mode<synchronous>, transform_indices = @transform_8, window_bounds = array<i64: 1, 128>}, {transform_indices = @transform_9, window_bounds = array<i64: 8, 1>}]} {
    %c0 = arith.constant 0 : index
    %c0_0 = arith.constant 0 : index
    %0 = vector.load %arg1[%c0, %c0_0] : memref<8x784xf32, #tpu.memory_space<vmem>>, vector<8x784xf32>
    %1 = arith.truncf %0 : vector<8x784xf32> to vector<8x784xbf16>
    %c0_1 = arith.constant 0 : index
    %c0_2 = arith.constant 0 : index
    %2 = vector.load %arg2[%c0_1, %c0_2] : memref<784x128xbf16, #tpu.memory_space<vmem>>, vector<784x128xbf16>
    %cst = arith.constant dense<0.000000e+00> : vector<8x128xf32>
    %3 = tpu.matmul %1, %2, %cst {dimension_numbers = #tpu.dot_dimension_numbers<[1], [0], [0], [1], [0, 0, 1, 1], [], []>} : vector<8x784xbf16>, vector<784x128xbf16>, vector<8x128xf32> -> vector<8x128xf32>
    %c0_3 = arith.constant 0 : index
    %c0_4 = arith.constant 0 : index
    %4 = vector.load %arg3[%c0_3, %c0_4] : memref<1x128xf32, #tpu.memory_space<vmem>>, vector<1x128xf32>
    %5 = vector.broadcast %4 : vector<1x128xf32> to vector<8x128xf32>
    %6 = arith.addf %3, %5 : vector<8x128xf32>
    %cst_5 = arith.constant 0.000000e+00 : f32
    %7 = vector.broadcast %cst_5 : f32 to vector<8x128xf32>
    %8 = arith.cmpf oge, %6, %7 : vector<8x128xf32>
    %cst_6 = arith.constant 2.000000e-01 : f32
    %9 = vector.broadcast %cst_6 : f32 to vector<8x128xf32>
    %10 = arith.mulf %9, %6 : vector<8x128xf32>
    %11 = arith.select %8, %6, %10 : vector<8x128xi1>, vector<8x128xf32>
    %12 = arith.truncf %11 : vector<8x128xf32> to vector<8x128xbf16>
    %c0_7 = arith.constant 0 : index
    %c0_8 = arith.constant 0 : index
    %13 = vector.load %arg4[%c0_7, %c0_8] : memref<128x128xbf16, #tpu.memory_space<vmem>>, vector<128x128xbf16>
    %cst_9 = arith.constant dense<0.000000e+00> : vector<8x128xf32>
    %14 = tpu.matmul %12, %13, %cst_9 {dimension_numbers = #tpu.dot_dimension_numbers<[1], [0], [0], [1], [0, 0, 1, 1], [], []>} : vector<8x128xbf16>, vector<128x128xbf16>, vector<8x128xf32> -> vector<8x128xf32>
    %c0_10 = arith.constant 0 : index
    %c0_11 = arith.constant 0 : index
    %15 = vector.load %arg5[%c0_10, %c0_11] : memref<1x128xf32, #tpu.memory_space<vmem>>, vector<1x128xf32>
    %16 = vector.broadcast %15 : vector<1x128xf32> to vector<8x128xf32>
    %17 = arith.addf %14, %16 : vector<8x128xf32>
    %cst_12 = arith.constant 0.000000e+00 : f32
    %18 = vector.broadcast %cst_12 : f32 to vector<8x128xf32>
    %19 = arith.cmpf oge, %17, %18 : vector<8x128xf32>
    %cst_13 = arith.constant 2.000000e-01 : f32
    %20 = vector.broadcast %cst_13 : f32 to vector<8x128xf32>
    %21 = arith.mulf %20, %17 : vector<8x128xf32>
    %22 = arith.select %19, %17, %21 : vector<8x128xi1>, vector<8x128xf32>
    %23 = arith.truncf %22 : vector<8x128xf32> to vector<8x128xbf16>
    %c0_14 = arith.constant 0 : index
    %c0_15 = arith.constant 0 : index
    %24 = vector.load %arg6[%c0_14, %c0_15] : memref<128x128xbf16, #tpu.memory_space<vmem>>, vector<128x128xbf16>
    %cst_16 = arith.constant dense<0.000000e+00> : vector<8x128xf32>
    %25 = tpu.matmul %23, %24, %cst_16 {dimension_numbers = #tpu.dot_dimension_numbers<[1], [0], [0], [1], [0, 0, 1, 1], [], []>} : vector<8x128xbf16>, vector<128x128xbf16>, vector<8x128xf32> -> vector<8x128xf32>
    %c0_17 = arith.constant 0 : index
    %c0_18 = arith.constant 0 : index
    %26 = vector.load %arg7[%c0_17, %c0_18] : memref<1x128xf32, #tpu.memory_space<vmem>>, vector<1x128xf32>
    %27 = vector.broadcast %26 : vector<1x128xf32> to vector<8x128xf32>
    %28 = arith.addf %25, %27 : vector<8x128xf32>
    %cst_19 = arith.constant 0.000000e+00 : f32
    %29 = vector.broadcast %cst_19 : f32 to vector<8x128xf32>
    %30 = arith.cmpf oge, %28, %29 : vector<8x128xf32>
    %cst_20 = arith.constant 2.000000e-01 : f32
    %31 = vector.broadcast %cst_20 : f32 to vector<8x128xf32>
    %32 = arith.mulf %31, %28 : vector<8x128xf32>
    %33 = arith.select %30, %28, %32 : vector<8x128xi1>, vector<8x128xf32>
    %34 = arith.truncf %33 : vector<8x128xf32> to vector<8x128xbf16>
    %c0_21 = arith.constant 0 : index
    %c0_22 = arith.constant 0 : index
    %35 = vector.load %arg8[%c0_21, %c0_22] : memref<128x128xbf16, #tpu.memory_space<vmem>>, vector<128x128xbf16>
    %cst_23 = arith.constant dense<0.000000e+00> : vector<8x128xf32>
    %36 = tpu.matmul %34, %35, %cst_23 {dimension_numbers = #tpu.dot_dimension_numbers<[1], [0], [0], [1], [0, 0, 1, 1], [], []>} : vector<8x128xbf16>, vector<128x128xbf16>, vector<8x128xf32> -> vector<8x128xf32>
    %c0_24 = arith.constant 0 : index
    %c0_25 = arith.constant 0 : index
    %37 = vector.load %arg9[%c0_24, %c0_25] : memref<1x128xf32, #tpu.memory_space<vmem>>, vector<1x128xf32>
    %38 = vector.broadcast %37 : vector<1x128xf32> to vector<8x128xf32>
    %39 = arith.addf %36, %38 : vector<8x128xf32>
    %40 = vector.extract_strided_slice %39 {offsets = [0, 0], sizes = [8, 1], strides = [1, 1]} : vector<8x128xf32> to vector<8x1xf32>
    %c0_26 = arith.constant 0 : index
    %c0_27 = arith.constant 0 : index
    %41 = vector.load %arg10[%c0_26, %c0_27] : memref<8x1xf32, #tpu.memory_space<vmem>>, vector<8x1xf32>
    tpu.vector_store %arg10[%c0_26, %c0_27], %40 {strides = array<i32>} : memref<8x1xf32, #tpu.memory_space<vmem>>, vector<8x1xf32>,
    return
  }
  func.func @transform_0(%arg0: i32) -> (i32, i32) {
    %c0_i32 = arith.constant 0 : i32
    %c0_i32_0 = arith.constant 0 : i32
    return %arg0, %c0_i32 : i32, i32
  }
  func.func @transform_1(%arg0: i32) -> (i32, i32) {
    %c0_i32 = arith.constant 0 : i32
    %c0_i32_0 = arith.constant 0 : i32
    %c0_i32_1 = arith.constant 0 : i32
    return %c0_i32, %c0_i32_0 : i32, i32
  }
  func.func @transform_2(%arg0: i32) -> (i32, i32) {
    %c0_i32 = arith.constant 0 : i32
    %c0_i32_0 = arith.constant 0 : i32
    %c0_i32_1 = arith.constant 0 : i32
    return %c0_i32, %c0_i32_0 : i32, i32
  }
  func.func @transform_3(%arg0: i32) -> (i32, i32) {
    %c0_i32 = arith.constant 0 : i32
    %c0_i32_0 = arith.constant 0 : i32
    %c0_i32_1 = arith.constant 0 : i32
    return %c0_i32, %c0_i32_0 : i32, i32
  }
  func.func @transform_4(%arg0: i32) -> (i32, i32) {
    %c0_i32 = arith.constant 0 : i32
    %c0_i32_0 = arith.constant 0 : i32
    %c0_i32_1 = arith.constant 0 : i32
    return %c0_i32, %c0_i32_0 : i32, i32
  }
  func.func @transform_5(%arg0: i32) -> (i32, i32) {
    %c0_i32 = arith.constant 0 : i32
    %c0_i32_0 = arith.constant 0 : i32
    %c0_i32_1 = arith.constant 0 : i32
    return %c0_i32, %c0_i32_0 : i32, i32
  }
  func.func @transform_6(%arg0: i32) -> (i32, i32) {
    %c0_i32 = arith.constant 0 : i32
    %c0_i32_0 = arith.constant 0 : i32
    %c0_i32_1 = arith.constant 0 : i32
    return %c0_i32, %c0_i32_0 : i32, i32
  }
  func.func @transform_7(%arg0: i32) -> (i32, i32) {
    %c0_i32 = arith.constant 0 : i32
    %c0_i32_0 = arith.constant 0 : i32
    %c0_i32_1 = arith.constant 0 : i32
    return %c0_i32, %c0_i32_0 : i32, i32
  }
  func.func @transform_8(%arg0: i32) -> (i32, i32) {
    %c0_i32 = arith.constant 0 : i32
    %c0_i32_0 = arith.constant 0 : i32
    %c0_i32_1 = arith.constant 0 : i32
    return %c0_i32, %c0_i32_0 : i32, i32
  }
  func.func @transform_9(%arg0: i32) -> (i32, i32) {
    %c0_i32 = arith.constant 0 : i32
    %c0_i32_0 = arith.constant 0 : i32
    return %arg0, %c0_i32 : i32, i32
  }
}

</mosaic_0001>

<bundles_post_ra>
// kernel: discriminator_forward.1
= control target key start
LH: loop header
LB: loop body
LE: loop exit
PB: predicated region body
PF: predicated region fallthrough
CT: control target
= control target key end

     0   :  { %s1701_s30 = smov 0   ;;  %s1999_s0 = inlined_call_operand.vmem [shape: f32[32,784], index: 0, kind: input, shape index: {}]   ;;  %s2000_s1 = inlined_call_operand.vmem [shape: bf16[784,128], index: 1, kind: input, shape index: {}]   ;;  %s2001_s2 = inlined_call_operand.vmem [shape: f32[1,128], index: 2, kind: input, shape index: {}]   ;;  %s2002_s3 = inlined_call_operand.vmem [shape: bf16[128,128], index: 3, kind: input, shape index: {}]   ;;  %s2003_s4 = inlined_call_operand.vmem [shape: f32[1,128], index: 4, kind: input, shape index: {}]   ;;  %s2004_s5 = inlined_call_operand.vmem [shape: bf16[128,128], index: 5, kind: input, shape index: {}]   ;;  %s2005_s6 = inlined_call_operand.vmem [shape: f32[1,128], index: 6, kind: input, shape index: {}]   ;;  %s2006_s7 = inlined_call_operand.vmem [shape: bf16[128,128], index: 7, kind: input, shape index: {}]   ;;  %s2007_s8 = inlined_call_operand.vmem [shape: f32[1,128], index: 8, kind: input, shape index: {}]   ;;  %s2008_s9 = inlined_call_operand.vmem [shape: f32[32,1], index: 9, kind: output, shape index: {}]  }
   0x1 LB: > { %s1309_s10 = sadd.s32 4294967295, %s1647_s30   ;;  %p1313_p0 = scmp.ge.s32.totalorder %s1647_s30, 1  ;;  %s1647_s30 = sphi %s1701_s30, %s19_s30  }
   0x2   : > { %p287_p1 = scmp.lt.s32.totalorder %s1647_s30, 5 }
   0x4   : > { %p288_p2 = pnand %p1313_p0, %p287_p1 }
   0x5   : > { %p322_p3 = scmp.lt.s32.totalorder (!%p288_p2), %s1309_s10, 3 }
   0x6   : > { %291 = sbr.rel (%p288_p2) target bundleno = 881 (0x371), region = 56 }
   0xb   : > { %v1568_v0 = vld [vmem:[%s2000_s1 + $0x78] sm:$0xff]   ;;  %v1572_v4 = vld [vmem:[%s2000_s1 + $0x70] sm:$0xff]   ;;  %v1576_v8 = vld [vmem:[%s2000_s1 + $0x68] sm:$0xff]   ;;  %s2010_s10 = smov (!%p322_p3, %s1309_s10), 3  ;;  %v1649_v44 = vmov 0.0   ;;  %vm1650_vm0 = vmmov 0  }
   0xc   : > { %v1569_v1 = vld [vmem:[%s2000_s1 + $0x38] sm:$0xff]   ;;  %1396 = vmatprep.subr.bf16.mxu0 %v1568_v0  ;;  %v1573_v5 = vld [vmem:[%s2000_s1 + $0x30] sm:$0xff]   ;;  %v1577_v9 = vld [vmem:[%s2000_s1 + $0x28] sm:$0xff]   ;;  %s1557_s23 = smul.u32 56, %s2010_s10  ;;  %vm745_vm1 = vcmask 130048   ;;  %s1315_s17 = sshll.u32 %s2010_s10, 3 }
   0xd   : > { %v1570_v2 = vld [vmem:[%s2000_s1 + $0xf8] sm:$0xff]   ;;  %1397 = vmatpush3.bf16.msra.mxu0 %v1569_v1  ;;  %v1574_v6 = vld [vmem:[%s2000_s1 + $0xf0] sm:$0xff]   ;;  %v1578_v10 = vld [vmem:[%s2000_s1 + $0xe8] sm:$0xff]   ;;  %s330_s22 = scalar_lea.vmem %s2008_s9, %s1315_s17  ;;  %vm1254_vm5 = vcmask 7168  }
   0xe   : > { %v1571_v3 = vld [vmem:[%s2000_s1 + $0xb8] sm:$0xff]   ;;  %1418 = vmatprep.subr.bf16.mxu1 %v1570_v2  ;;  %1398 = vmatprep.subr.bf16.mxu0 %v1572_v4  ;;  %v1575_v7 = vld [vmem:[%s2000_s1 + $0xb0] sm:$0xff]   ;;  %v1579_v11 = vld [vmem:[%s2000_s1 + $0xa8] sm:$0xff]   ;;  %s1806_s15 = scalar_lea.vmem %s1999_s0, %s1557_s23 }
   0xf   : > { %1419 = vmatpush3.bf16.msra.mxu1 %v1571_v3  ;;  %v1580_v12 = vld [vmem:[%s2000_s1 + $0x60] sm:$0xff]   ;;  %v1584_v16 = vld [vmem:[%s2000_s1 + $0x58] sm:$0xff]   ;;  %v1588_v20 = vld [vmem:[%s2000_s1 + $0x50] sm:$0xff]  }
  0x10   : > { %1420 = vmatprep.subr.bf16.mxu1 %v1574_v6  ;;  %v1581_v13 = vld [vmem:[%s2000_s1 + $0x20] sm:$0xff]   ;;  %v1585_v17 = vld [vmem:[%s2000_s1 + $0x18] sm:$0xff]   ;;  %v1589_v21 = vld [vmem:[%s2000_s1 + $0x10] sm:$0xff]  }
  0x11   : > { %1399 = vmatpush3.bf16.msra.mxu0 %v1573_v5  ;;  %v1582_v14 = vld [vmem:[%s2000_s1 + $0xe0] sm:$0xff]   ;;  %v1586_v18 = vld [vmem:[%s2000_s1 + $0xd8] sm:$0xff]   ;;  %v1590_v22 = vld [vmem:[%s2000_s1 + $0xd0] sm:$0xff]  }
  0x12   : > { %1400 = vmatprep.subr.bf16.mxu0 %v1576_v8  ;;  %v1583_v15 = vld [vmem:[%s2000_s1 + $0xa0] sm:$0xff]   ;;  %v1587_v19 = vld [vmem:[%s2000_s1 + $0x98] sm:$0xff]   ;;  %v1591_v23 = vld [vmem:[%s2000_s1 + $0x90] sm:$0xff]  }
  0x13   : > { %1421 = vmatpush3.bf16.msra.mxu1 %v1575_v7  ;;  %v1592_v24 = vld [vmem:[%s2000_s1 + $0x48] sm:$0xff]   ;;  %v1596_v28 = vld [vmem:[%s2000_s1 + $0x40] sm:$0xff]   ;;  %v1600_v36 = vld [vmem:[%s2000_s1 + $0x178] sm:$0xff]  }
  0x14   : > { %1422 = vmatprep.subr.bf16.mxu1 %v1578_v10  ;;  %v1593_v25 = vld [vmem:[%s2000_s1 + $0x8] sm:$0xff]   ;;  %v1597_v29 = vld [vmem:[%s2000_s1] sm:$0xff]   ;;  %v335_v37 = vld [vmem:[%s1806_s15 + $0x18] sm:$0xff] }
  0x15   : > { %1401 = vmatpush3.bf16.msra.mxu0 %v1577_v9  ;;  %v1594_v26 = vld [vmem:[%s2000_s1 + $0xc8] sm:$0xff]   ;;  %v1598_v30 = vld [vmem:[%s2000_s1 + $0xc0] sm:$0xff]   ;;  %v342_v38 = vpack.c.bf16 %v335_v37, %v335_v37  ;;  %v1601_v39 = vld [vmem:[%s2000_s1 + $0x138] sm:$0xff]  }
  0x16   : > { %1402 = vmatprep.subr.bf16.mxu0 %v1580_v12  ;;  %v1595_v27 = vld [vmem:[%s2000_s1 + $0x88] sm:$0xff]   ;;  %v1599_v33 = vld [vmem:[%s2000_s1 + $0x80] sm:$0xff]   ;;  %v334_v40 = vld [vmem:[%s1806_s15 + $0x10] sm:$0xff] }
  0x17   : > { %1423 = vmatpush3.bf16.msra.mxu1 %v1579_v11  ;;  %v333_v31 = vld [vmem:[%s1806_s15 + $0x8] sm:$0xff]  ;;  %v332_v34 = vld [vmem:[%s1806_s15] sm:$0xff]  ;;  %821 = vmatprep.mubr.bf16.mxu1 %v342_v38  ;;  %v341_v41 = vpack.c.bf16 %v334_v40, %v334_v40  ;;  %v1602_v42 = vld [vmem:[%s2000_s1 + $0x170] sm:$0xff]  }
  0x18   : > { %1424 = vmatprep.subr.bf16.mxu1 %v1582_v14  ;;  %v340_v32 = vpack.c.bf16 %v333_v31, %v333_v31  ;;  %v339_v35 = vpack.c.bf16 %v332_v34, %v332_v34  ;;  %v1603_v43 = vld [vmem:[%s2000_s1 + $0x130] sm:$0xff]   ;;  %v1604_v45 = vld [vmem:[%s2000_s1 + $0x168] sm:$0xff]   ;;  %v1606_v47 = vld [vmem:[%s2000_s1 + $0x160] sm:$0xff]  }
  0x19   : > { %1403 = vmatpush3.bf16.msra.mxu0 %v1581_v13  ;;  %v1605_v46 = vld [vmem:[%s2000_s1 + $0x128] sm:$0xff]   ;;  %v1607_v48 = vld [vmem:[%s2000_s1 + $0x120] sm:$0xff]   ;;  %v1608_v49 = vld [vmem:[%s2000_s1 + $0x158] sm:$0xff]  }
  0x1a   : > { %1404 = vmatprep.subr.bf16.mxu0 %v1584_v16  ;;  %781 = vmatprep.mubr.bf16.mxu0 %v340_v32  ;;  %v1609_v50 = vld [vmem:[%s2000_s1 + $0x118] sm:$0xff]   ;;  %v1610_v51 = vld [vmem:[%s2000_s1 + $0x150] sm:$0xff]   ;;  %v1616_v53 = vld [vmem:[%s2000_s1 + $0x180] sm:$0xff]  }
  0x1b   : > { %1425 = vmatpush3.bf16.msra.mxu1 %v1583_v15  ;;  %v1611_v52 = vld [vmem:[%s2000_s1 + $0x110] sm:$0xff]   ;;  %v337_v54 = vld [vmem:[%s1806_s15 + $0x28] sm:$0xff]  ;;  %v1614_v60 = vld [vmem:[%s2000_s1 + $0x140] sm:$0xff]  }
  0x1c   : > { %1426 = vmatprep.subr.bf16.mxu1 %v1586_v18  ;;  %v1612_v55 = vld [vmem:[%s2000_s1 + $0x148] sm:$0xff]   ;;  %v344_v56 = vpack.c.bf16 %v337_v54, %v337_v54  ;;  %v338_v57 = vld [vmem:[%s1806_s15 + $0x30] sm:$0xff]  ;;  %v1615_v61 = vld [vmem:[%s2000_s1 + $0x100] sm:$0xff]  }
  0x1d   : > { %1405 = vmatpush3.bf16.msra.mxu0 %v1585_v17  ;;  %v345_v58 = vpack.c.bf16 %v338_v57, %v338_v57  ;;  %v1613_v59 = vld [vmem:[%s2000_s1 + $0x108] sm:$0xff]   ;;  %v336_v62 = vld [vmem:[%s1806_s15 + $0x20] sm:$0xff]  ;;  %v1617_v0 = vld [vmem:[%s2002_s3 + $0x38] sm:$0xff]  }
  0x1e   : > { %1406 = vmatprep.subr.bf16.mxu0 %v1588_v20  ;;  %v343_v63 = vpack.c.bf16 %v336_v62, %v336_v62  ;;  %v1618_v1 = vld [vmem:[%s2002_s3 + $0x30] sm:$0xff]   ;;  %v1619_v2 = vld [vmem:[%s2002_s3 + $0x28] sm:$0xff]   ;;  %v1620_v3 = vld [vmem:[%s2002_s3 + $0x20] sm:$0xff]  }
  0x1f   : > { %1427 = vmatpush3.bf16.msra.mxu1 %v1587_v19  ;;  %v1621_v4 = vld [vmem:[%s2002_s3 + $0x18] sm:$0xff]   ;;  %v1622_v5 = vld [vmem:[%s2002_s3 + $0x10] sm:$0xff]   ;;  %v1623_v6 = vld [vmem:[%s2002_s3 + $0x8] sm:$0xff]  }
  0x20   : > { %1428 = vmatprep.subr.bf16.mxu1 %v1590_v22  ;;  %v1624_v7 = vld [vmem:[%s2002_s3] sm:$0xff]   ;;  %v1625_v8 = vld [vmem:[%s2004_s5 + $0x38] sm:$0xff]   ;;  %v1626_v9 = vld [vmem:[%s2004_s5 + $0x30] sm:$0xff]  }
  0x21   : > { %1407 = vmatpush3.bf16.msra.mxu0 %v1589_v21  ;;  %v1627_v10 = vld [vmem:[%s2004_s5 + $0x28] sm:$0xff]   ;;  %v1628_v11 = vld [vmem:[%s2004_s5 + $0x20] sm:$0xff]   ;;  %v1629_v12 = vld [vmem:[%s2004_s5 + $0x18] sm:$0xff]  }
  0x22   : > { %1408 = vmatprep.subr.bf16.mxu0 %v1592_v24  ;;  %v1630_v13 = vld [vmem:[%s2004_s5 + $0x10] sm:$0xff]  }
  0x23   : > { %1429 = vmatpush3.bf16.msra.mxu1 %v1591_v23 }
  0x24   : > { %1430 = vmatprep.subr.bf16.mxu1 %v1594_v26 }
  0x25   : > { %1409 = vmatpush3.bf16.msra.mxu0 %v1593_v25 }
  0x26   : > { %1410 = vmatprep.subr.bf16.mxu0 %v1596_v28 }
  0x27   : > { %1431 = vmatpush3.bf16.msra.mxu1 %v1595_v27  ;;  %v1316_v27 = vld [vmem:[%s2001_s2] ss:$0 sm:$0xff] }
  0x28   : > { %1432 = vmatprep.subr.bf16.mxu1 %v1598_v30 }
  0x29   : > { %1411 = vmatpush3.bf16.msra.mxu0 %v1597_v29 }
  0x2a   : > { %1440 = vmatprep.subr.bf16.mxu0 %v1600_v36 }
  0x2b   : > { %1433 = vmatpush3.bf16.msra.mxu1 %v1599_v33 }
  0x2c   : > { %782 = vmatmul.mubr.bf16.vlgmr.msra.gmra.mxu0 %v339_v35  ;;  %1491 = vmatprep.subr.bf16.mxu1 %v1649_v44 }
  0x2d   : > { %1441 = vmatpush3.bf16.msra.mxu0 %v1601_v39  ;;  %861 = vmatprep.mubr.bf16.mxu0 %v344_v56 }
  0x2e   : > { %822 = vmatmul.mubr.bf16.vlgmr.msra.gmra.mxu1 %v341_v41  ;;  %1442 = vmatprep.subr.bf16.mxu0 %v1602_v42  ;;  %v1631_v41 = vld [vmem:[%s2004_s5 + $0x8] sm:$0xff]   ;;  %v1632_v42 = vld [vmem:[%s2004_s5] sm:$0xff]  }
  0x2f   : > { %1493 = vmatprep.mubr.msk.bf16.mxu1 %vm1650_vm0, %v1649_v44  ;;  %1492 = vmatpush3.bf16.msra.mxu1 %v1616_v53 }
  0x30   : > { %1497 = vmatprep.subr.bf16.mxu1 %v1649_v44 }
  0x31   : > { %1443 = vmatpush3.bf16.msra.mxu0 %v1603_v43  ;;  %v1633_v43 = vld [vmem:[%s2006_s7 + $0x38] sm:$0xff]  }
  0x32   : > { %1444 = vmatprep.subr.bf16.mxu0 %v1604_v45  ;;  %v1634_v45 = vld [vmem:[%s2006_s7 + $0x30] sm:$0xff]  }
  0x35   : > { %1445 = vmatpush3.bf16.msra.mxu0 %v1605_v46  ;;  %v1635_v46 = vld [vmem:[%s2006_s7 + $0x28] sm:$0xff]  }
  0x36   : > { %1446 = vmatprep.subr.bf16.mxu0 %v1606_v47  ;;  %1494 = vmatmul.mubr.msk.bf16.vlgmr.msra.gmra.mxu1 %vm745_vm1, %v345_v58  ;;  %v1636_v47 = vld [vmem:[%s2006_s7 + $0x20] sm:$0xff]  }
  0x37   : > { %1513 = vmatprep.mubr.msk.bf16.mxu1 %vm1650_vm0, %v1649_v44  ;;  %1498 = vmatpush3.bf16.msra.mxu1 %v1617_v0 }
  0x38   : > { %1499 = vmatprep.subr.bf16.mxu1 %v1649_v44 }
  0x39   : > { %1447 = vmatpush3.bf16.msra.mxu0 %v1607_v48  ;;  %v1637_v48 = vld [vmem:[%s2006_s7 + $0x18] sm:$0xff]  }
  0x3a   : > { %1448 = vmatprep.subr.bf16.mxu0 %v1608_v49  ;;  %v1638_v49 = vld [vmem:[%s2006_s7 + $0x10] sm:$0xff]  }
  0x3b   : > { %1500 = vmatpush3.bf16.msra.mxu1 %v1618_v1 }
  0x3c   : > { %1501 = vmatprep.subr.bf16.mxu1 %v1649_v44 }
  0x3d   : > { %1449 = vmatpush3.bf16.msra.mxu0 %v1609_v50  ;;  %v1367_v50 = vld [vmem:[%s2003_s4] ss:$0 sm:$0xff] }
  0x3e   : > { %1450 = vmatprep.subr.bf16.mxu0 %v1610_v51 }
  0x3f   : > { %1502 = vmatpush3.bf16.msra.mxu1 %v1619_v2 }
  0x40   : > { %1503 = vmatprep.subr.bf16.mxu1 %v1649_v44 }
  0x41   : > { %1451 = vmatpush3.bf16.msra.mxu0 %v1611_v52 }
  0x42   : > { %1452 = vmatprep.subr.bf16.mxu0 %v1612_v55 }
  0x43   : > { %1504 = vmatpush3.bf16.msra.mxu1 %v1620_v3 }
  0x44   : > { %1505 = vmatprep.subr.bf16.mxu1 %v1649_v44 }
  0x45   : > { %1453 = vmatpush3.bf16.msra.mxu0 %v1613_v59  ;;  %v1639_v59 = vld [vmem:[%s2006_s7 + $0x8] sm:$0xff]  }
  0x46   : > { %1454 = vmatprep.subr.bf16.mxu0 %v1614_v60  ;;  %v1640_v60 = vld [vmem:[%s2006_s7] sm:$0xff]  }
  0x47   : > { %1506 = vmatpush3.bf16.msra.mxu1 %v1621_v4 }
  0x48   : > { %1507 = vmatprep.subr.bf16.mxu1 %v1649_v44 }
  0x49   : > { %1455 = vmatpush3.bf16.msra.mxu0 %v1615_v61  ;;  %v1376_v61 = vld [vmem:[%s2005_s6] ss:$0 sm:$0xff] }
  0x4a   : > { %1517 = vmatprep.subr.bf16.mxu0 %v1649_v44 }
  0x4b   : > { %1508 = vmatpush3.bf16.msra.mxu1 %v1622_v5 }
  0x4c   : > { %862 = vmatmul.mubr.bf16.vlgmr.msra.gmra.mxu0 %v343_v63  ;;  %1509 = vmatprep.subr.bf16.mxu1 %v1649_v44 }
  0x4d   : > { %1533 = vmatprep.mubr.msk.bf16.mxu0 %vm1650_vm0, %v1649_v44  ;;  %1518 = vmatpush3.bf16.msra.mxu0 %v1625_v8 }
  0x4e   : > { %1519 = vmatprep.subr.bf16.mxu0 %v1649_v44 }
  0x4f   : > { %1510 = vmatpush3.bf16.msra.mxu1 %v1623_v6 }
  0x50   : > { %1511 = vmatprep.subr.bf16.mxu1 %v1649_v44 }
  0x51   : > { %1520 = vmatpush3.bf16.msra.mxu0 %v1626_v9 }
  0x52   : > { %1521 = vmatprep.subr.bf16.mxu0 %v1649_v44 }
  0x53   : > { %1512 = vmatpush3.bf16.msra.mxu1 %v1624_v7 }
  0x54   : > { %1537 = vmatprep.subr.bf16.mxu1 %v1649_v44 }
  0x55   : > { %1522 = vmatpush3.bf16.msra.mxu0 %v1627_v10 }
  0x56   : > { %1523 = vmatprep.subr.bf16.mxu0 %v1649_v44 }
  0x59   : > { %1524 = vmatpush3.bf16.msra.mxu0 %v1628_v11 }
  0x5a   : > { %1525 = vmatprep.subr.bf16.mxu0 %v1649_v44 }
  0x5d   : > { %1526 = vmatpush3.bf16.msra.mxu0 %v1629_v12 }
  0x5e   : > { %1527 = vmatprep.subr.bf16.mxu0 %v1649_v44 }
  0x61   : > { %1528 = vmatpush3.bf16.msra.mxu0 %v1630_v13 }
  0x62   : > { %1529 = vmatprep.subr.bf16.mxu0 %v1649_v44 }
  0x65   : > { %1530 = vmatpush3.bf16.msra.mxu0 %v1631_v41 }
  0x66   : > { %1531 = vmatprep.subr.bf16.mxu0 %v1649_v44 }
  0x69   : > { %1532 = vmatpush3.bf16.msra.mxu0 %v1632_v42 }
  0xec   : > { %v1412_v14 = vpop.f32.mrf.mxu0 }
  0xee   : > { %v1413_v15 = vpop.f32.mrf.mxu0  ;;  %v1434_v16 = vpop.f32.mrf.mxu1 }
  0xef   : > { %v1414_v26 = vadd.f32 %v1413_v15, %v1412_v14 }
  0xf0   : > { %v1415_v17 = vpop.f32.mrf.mxu0  ;;  %v1435_v18 = vpop.f32.mrf.mxu1 }
  0xf1   : > { %v784_v28 = vadd.f32 %v1414_v26, %v1316_v27  ;;  %v1436_v29 = vadd.f32 %v1435_v18, %v1434_v16 }
  0xf2   : > { %v1416_v19 = vpop.f32.mrf.mxu0  ;;  %v1437_v20 = vpop.f32.mrf.mxu1 }
  0xf3   : > { %v824_v32 = vadd.f32 %v1436_v29, %v784_v28 }
  0xf4   : > { %v1438_v21 = vpop.f32.mrf.mxu1 }
  0xf6   : > { %v903_v22 = vpop.f32.mrf.mxu1 }
  0xf8   : > { %v1495_v23 = vpop.f32.mrf.mxu1 }
  0xfa   : > { %v906_v24 = vpop.f32.mrf.mxu1 }
  0xfc   : > { %v1496_v25 = vpop.f32.mrf.mxu1 }
 0x10c   : > { %v1456_v30 = vpop.f32.mrf.mxu0 }
 0x10e   : > { %v1457_v31 = vpop.f32.mrf.mxu0 }
 0x10f   : > { %v1458_v33 = vadd.f32 %v1457_v31, %v1456_v30 }
 0x110   : > { %v1459_v34 = vpop.f32.mrf.mxu0 }
 0x111   : > { %v864_v35 = vadd.f32 %v1458_v33, %v824_v32 }
 0x112   : > { %v1460_v36 = vpop.f32.mrf.mxu0 }
 0x113   : > { %v904_v37 = vadd.f32 %v903_v22, %v864_v35 }
 0x115   : > { %vm909_vm2 = vcmp.ge.f32.partialorder %v904_v37, 0.0  ;;  %v910_v38 = vmul.f32 0.2, %v904_v37 }
 0x117   : > { %v911_v39 = vsel %vm909_vm2, %v904_v37, %v910_v38 }
 0x118   : > { %v912_v40 = vpack.c.bf16 %v911_v39, %v911_v39 }
 0x11a   : > { %1514 = vmatmul.mubr.bf16.vlgmr.msra.gmra.mxu1 %v912_v40 }
 0x11b   : > { %1553 = vmatprep.mubr.msk.bf16.mxu1 %vm1650_vm0, %v1649_v44  ;;  %1538 = vmatpush3.bf16.msra.mxu1 %v1633_v43 }
 0x11c   : > { %1539 = vmatprep.subr.bf16.mxu1 %v1649_v44 }
 0x11f   : > { %1540 = vmatpush3.bf16.msra.mxu1 %v1634_v45 }
 0x120   : > { %1541 = vmatprep.subr.bf16.mxu1 %v1649_v44 }
 0x123   : > { %1542 = vmatpush3.bf16.msra.mxu1 %v1635_v46 }
 0x124   : > { %1543 = vmatprep.subr.bf16.mxu1 %v1649_v44 }
 0x127   : > { %1544 = vmatpush3.bf16.msra.mxu1 %v1636_v47 }
 0x128   : > { %1545 = vmatprep.subr.bf16.mxu1 %v1649_v44 }
 0x12b   : > { %1546 = vmatpush3.bf16.msra.mxu1 %v1637_v48 }
 0x12c   : > { %1547 = vmatprep.subr.bf16.mxu1 %v1649_v44 }
 0x12f   : > { %1548 = vmatpush3.bf16.msra.mxu1 %v1638_v49 }
 0x130   : > { %1549 = vmatprep.subr.bf16.mxu1 %v1649_v44 }
 0x133   : > { %1550 = vmatpush3.bf16.msra.mxu1 %v1639_v59 }
 0x134   : > { %1551 = vmatprep.subr.bf16.mxu1 %v1649_v44  ;;  %v1385_v44 = vld [vmem:[%s2007_s8] ss:$0 sm:$0xff] }
 0x137   : > { %1552 = vmatpush3.bf16.msra.mxu1 %v1640_v60 }
 0x1da   : > { %v1018_v51 = vpop.f32.mrf.mxu1 }
 0x1db   : > { %v1019_v52 = vadd.f32 %v1367_v50, %v1018_v51 }
 0x1dc   : > { %v1515_v53 = vpop.f32.mrf.mxu1 }
 0x1dd   : > { %vm1024_vm3 = vcmp.ge.f32.partialorder %v1019_v52, 0.0  ;;  %v1025_v54 = vmul.f32 0.2, %v1019_v52 }
 0x1de   : > { %v1021_v55 = vpop.f32.mrf.mxu1 }
 0x1df   : > { %v1026_v56 = vsel %vm1024_vm3, %v1019_v52, %v1025_v54 }
 0x1e0   : > { %v1027_v57 = vpack.c.bf16 %v1026_v56, %v1026_v56  ;;  %v1516_v58 = vpop.f32.mrf.mxu1 }
 0x1e2   : > { %1534 = vmatmul.mubr.bf16.vlgmr.msra.gmra.mxu0 %v1027_v57 }
 0x2a2   : > { %v1133_v62 = vpop.f32.mrf.mxu0 }
 0x2a3   : > { %v1134_v63 = vadd.f32 %v1376_v61, %v1133_v62 }
 0x2a4   : > { %v1535_v0 = vpop.f32.mrf.mxu0 }
 0x2a5   : > { %vm1139_vm4 = vcmp.ge.f32.partialorder %v1134_v63, 0.0  ;;  %v1140_v1 = vmul.f32 0.2, %v1134_v63 }
 0x2a6   : > { %v1136_v2 = vpop.f32.mrf.mxu0 }
 0x2a7   : > { %v1141_v3 = vsel %vm1139_vm4, %v1134_v63, %v1140_v1 }
 0x2a8   : > { %v1142_v4 = vpack.c.bf16 %v1141_v3, %v1141_v3  ;;  %v1536_v5 = vpop.f32.mrf.mxu0 }
 0x2aa   : > { %1554 = vmatmul.mubr.bf16.vlgmr.msra.gmra.mxu1 %v1142_v4 }
 0x36a   : > { %v1248_v6 = vpop.f32.mrf.mxu1 }
 0x36b   : > { %v1249_v7 = vadd.f32 %v1385_v44, %v1248_v6 }
 0x36c   : > { %v1555_v8 = vpop.f32.mrf.mxu1 }
 0x36d   : > { %1255 = vst.msk [vmem:[%s330_s22] sm:$0xff] %vm1254_vm5, %v1249_v7 }
 0x36e   : > { %v1251_v9 = vpop.f32.mrf.mxu1 }
 0x370   : > { %v1556_v10 = vpop.f32.mrf.mxu1 }
 0x371 PF: > { %s19_s30 = sadd.s32 1, %s1647_s30  }
 0x372   : > { %p16_p4 = scmp.ge.s32.totalorder %s19_s30, 6  }
 0x374   :  { %18 = sbr.rel (!%p16_p4) target bundleno = 1 (0x1), region = 86 }

</bundles_post_ra>
